<compile_context>
chip_gen: v6e
topology: v6e:2x2x1
jax: 0.10.0
libtpu: 0.0.40
codegen_flags: <defaults>
</compile_context>

<pallas_src>
import jax
import jax.numpy as jnp
from jax import lax
from jax.experimental import pallas as pl
from jax.experimental.pallas import tpu as pltpu


def energy_dnn_kernel(x_ref, w1_ref, b1_ref, w2_ref, b2_ref, w3_ref, b3_ref, o_ref):
    """Fused fc1+ReLU, fc2+ReLU, fc3 on one (Bt, F) batch tile.

      x_ref  : (Bt, F)  f32, torch layout (contiguous HBM rows)
      w1_ref : (H1, F)  compute dtype   h1 = W1 @ x^T        (MXU, f32 acc)
      w2_ref : (H2, H1) compute dtype   h2 = W2 @ relu(h1)   (MXU, f32 acc)
      w3_ref : (H2, 1)  f32             out = sum(h2 * w3)   (VPU + XLU)
      b*_ref : (H*, 1)  f32 (lane-broadcast bias)
      o_ref  : (1, Bt)  f32 lane-dense output
    """
    w1 = w1_ref[...]
    # Cast in VMEM (VPU) instead of a separate HBM pre-pass.
    x = x_ref[...].astype(w1.dtype)

    # fc1 + ReLU: contract the feature dims of (H1, F) and (Bt, F) -> (H1, Bt).
    h1 = lax.dot_general(
        w1, x,
        dimension_numbers=(((1,), (1,)), ((), ())),
        preferred_element_type=jnp.float32)
    h1 = jnp.maximum(h1 + b1_ref[...], 0.0)

    # fc2 + ReLU: only the matmul inputs drop back to the compute dtype.
    w2 = w2_ref[...]
    h2 = jnp.dot(w2, h1.astype(w2.dtype), preferred_element_type=jnp.float32)
    h2 = jnp.maximum(h2 + b2_ref[...], 0.0)

    # fc3 (single output unit): VPU multiply + XLU cross-sublane reduce; an MXU
    # pass producing one output row would waste the whole systolic array.
    out = jnp.sum(h2 * w3_ref[...], axis=0, keepdims=True) + b3_ref[...]
    o_ref[...] = out.astype(o_ref.dtype)


def _pick_block_b(B, cap=8192):
    """Batch (lane) tile size: big enough to amortize per-grid-step overhead,
    small enough to stay comfortably inside scoped VMEM, >= 2 steps when the
    batch allows it (so v7x can shard the parallel axis across both TCs)."""
    if B > cap:
        return cap                              # grid >= 2; ragged last tile OK
    if B < 256 or B % 128 != 0:
        return B                                # one full-array block
    return max(128, (B // 2 // 128) * 128)      # >= 2 lane-aligned tiles


def _build_call(B, F, H1, H2, O, block_b, w_dtype):
    grid = (pl.cdiv(B, block_b),)
    flops = 2 * B * (F * H1 + H1 * H2 + H2 * O)
    w_bytes = jnp.dtype(w_dtype).itemsize
    bytes_accessed = (
        B * F * 4 + B * O * 4
        + (H1 * F + H2 * H1) * w_bytes
        + (H1 + 2 * H2 + O) * 4)
    return pl.pallas_call(
        energy_dnn_kernel,
        out_shape=jax.ShapeDtypeStruct((O, B), jnp.float32),
        grid_spec=pltpu.PrefetchScalarGridSpec(
            num_scalar_prefetch=0,
            grid=grid,
            in_specs=[
                # x: contiguous (block_b, F) row slab, streamed over the grid.
                pl.BlockSpec((block_b, F), lambda i: (i, 0)),
                pl.BlockSpec((H1, F), lambda i: (0, 0)),    # w1 (grid-invariant)
                pl.BlockSpec((H1, 1), lambda i: (0, 0)),    # b1
                pl.BlockSpec((H2, H1), lambda i: (0, 0)),   # w2
                pl.BlockSpec((H2, 1), lambda i: (0, 0)),    # b2
                pl.BlockSpec((H2, 1), lambda i: (0, 0)),    # w3 column
                pl.BlockSpec((1, 1), lambda i: (0, 0)),     # b3
            ],
            # Lane-dense (1, block_b) output tile -> unmasked, contiguous stores.
            out_specs=pl.BlockSpec((O, block_b), lambda i: (0, i)),
        ),
        compiler_params=pltpu.CompilerParams(
            dimension_semantics=("parallel",),
            vmem_limit_bytes=32 * 1024 * 1024,
        ),
        cost_estimate=pl.CostEstimate(
            flops=flops, transcendentals=0, bytes_accessed=bytes_accessed),
    )


def prepare_params(params, compute_dtype=jnp.bfloat16):
    """One-time cast/reshape of torch-layout weights (hoisted out of the forward)."""
    H1 = params["w1"].shape[0]
    H2 = params["w2"].shape[0]
    O = params["w3"].shape[0]
    return {
        "w1": params["w1"].astype(compute_dtype),               # (H1, F)
        "b1": params["b1"].reshape(H1, 1).astype(jnp.float32),
        "w2": params["w2"].astype(compute_dtype),                # (H2, H1)
        "b2": params["b2"].reshape(H2, 1).astype(jnp.float32),
        "w3": params["w3"].reshape(H2, 1).astype(jnp.float32),   # column
        "b3": params["b3"].reshape(O, 1).astype(jnp.float32),
    }


@jax.jit
def energy_dnn_apply(x, prepped):
    """x: (B, F) float32 (standard-scaled features). Returns (B, 1) float32."""
    B, F = x.shape
    H1 = prepped["w1"].shape[0]
    H2 = prepped["w2"].shape[0]
    O = prepped["b3"].shape[0]
    block_b = _pick_block_b(B)
    call = _build_call(B, F, H1, H2, O, block_b, prepped["w1"].dtype)
    out_t = call(x.astype(jnp.float32), prepped["w1"], prepped["b1"],
                 prepped["w2"], prepped["b2"], prepped["w3"], prepped["b3"])
    # (1, B) -> (B, 1): a single row, so this reshape is layout-free.
    return out_t.reshape(B, O)


def energy_dnn_forward(x, params, *, compute_dtype=jnp.bfloat16):
    """Convenience wrapper (prep + apply). For repeated calls, call
    prepare_params once and reuse energy_dnn_apply."""
    return energy_dnn_apply(x, prepare_params(params, compute_dtype))


def init_params(key, input_size):
    """Deterministic nn.Linear-style init; weights kept in torch's (out, in) layout."""
    ks = jax.random.split(key, 6)

    def lin(kw, kb, fan_in, fan_out):
        bound = 1.0 / (fan_in ** 0.5)
        w = jax.random.uniform(kw, (fan_out, fan_in), jnp.float32, -bound, bound)
        b = jax.random.uniform(kb, (fan_out,), jnp.float32, -bound, bound)
        return w, b

    w1, b1 = lin(ks[0], ks[1], input_size, 64)
    w2, b2 = lin(ks[2], ks[3], 64, 32)
    w3, b3 = lin(ks[4], ks[5], 32, 1)
    return {"w1": w1, "b1": b1, "w2": w2, "b2": b2, "w3": w3, "b3": b3}


def reference_forward(x, p):
    h1 = jnp.maximum(x @ p["w1"].T + p["b1"], 0.0)
    h2 = jnp.maximum(h1 @ p["w2"].T + p["b2"], 0.0)
    return h2 @ p["w3"].T + p["b3"]


if __name__ == "__main__":
    key = jax.random.PRNGKey(0)
    k_x, k_p, k_x2 = jax.random.split(key, 3)

    batch = 8
    input_size = 16  # number of (standard-scaled) features
    x = jax.random.normal(k_x, (batch, input_size), jnp.float32)
    params = init_params(k_p, input_size)
    ref = reference_forward(x, params)

    # f32 compute path: matches the PyTorch module's numerics closely.
    prepped_f32 = prepare_params(params, jnp.float32)
    out_f32 = jax.block_until_ready(energy_dnn_apply(x, prepped_f32))
    assert out_f32.shape == (batch, 1)
    assert jnp.allclose(out_f32, ref, atol=1e-4, rtol=1e-4)

    # Default perf path: bf16 MXU inputs with f32 accumulation.
    prepped = prepare_params(params)
    out = jax.block_until_ready(energy_dnn_apply(x, prepped))
    assert out.shape == (batch, 1)
    assert jnp.allclose(out, ref, atol=2e-2, rtol=2e-2)

    # Tiled / multi-step grid path (exercises the batch-lane pipeline).
    x_big = jax.random.normal(k_x2, (512, input_size), jnp.float32)
    ref_big = reference_forward(x_big, params)
    out_big = jax.block_until_ready(energy_dnn_apply(x_big, prepped))
    assert out_big.shape == (512, 1)
    assert jnp.allclose(out_big, ref_big, atol=2e-2, rtol=2e-2)

    print("KERNEL_OK")
</pallas_src>

<mosaic_0001>
module attributes {stable_mosaic.version = 11 : i64} {
  func.func @energy_dnn_kernel(%arg0: i32, %arg1: memref<8x16xf32, #tpu.memory_space<vmem>>, %arg2: memref<64x16xf32, #tpu.memory_space<vmem>>, %arg3: memref<64x1xf32, #tpu.memory_space<vmem>>, %arg4: memref<32x64xf32, #tpu.memory_space<vmem>>, %arg5: memref<32x1xf32, #tpu.memory_space<vmem>>, %arg6: memref<32x1xf32, #tpu.memory_space<vmem>>, %arg7: memref<1x1xf32, #tpu.memory_space<vmem>>, %arg8: memref<1x8xf32, #tpu.memory_space<vmem>>) attributes {dimension_semantics = [#tpu.dimension_semantics<parallel>], iteration_bounds = array<i64: 1>, scalar_prefetch = 0 : i64, scratch_operands = 0 : i64, tpu.core_type = #tpu.core_type<tc>, window_params = [{transform_indices = @transform_0, window_bounds = array<i64: 8, 16>}, {pipeline_mode = #tpu.pipeline_mode<synchronous>, transform_indices = @transform_1, window_bounds = array<i64: 64, 16>}, {pipeline_mode = #tpu.pipeline_mode<synchronous>, transform_indices = @transform_2, window_bounds = array<i64: 64, 1>}, {pipeline_mode = #tpu.pipeline_mode<synchronous>, transform_indices = @transform_3, window_bounds = array<i64: 32, 64>}, {pipeline_mode = #tpu.pipeline_mode<synchronous>, transform_indices = @transform_4, window_bounds = array<i64: 32, 1>}, {pipeline_mode = #tpu.pipeline_mode<synchronous>, transform_indices = @transform_5, window_bounds = array<i64: 32, 1>}, {pipeline_mode = #tpu.pipeline_mode<synchronous>, transform_indices = @transform_6, window_bounds = array<i64: 1, 1>}, {transform_indices = @transform_7, window_bounds = array<i64: 1, 8>}]} {
    %c0 = arith.constant 0 : index
    %c0_0 = arith.constant 0 : index
    %0 = vector.load %arg2[%c0, %c0_0] : memref<64x16xf32, #tpu.memory_space<vmem>>, vector<64x16xf32>
    %c0_1 = arith.constant 0 : index
    %c0_2 = arith.constant 0 : index
    %1 = vector.load %arg1[%c0_1, %c0_2] : memref<8x16xf32, #tpu.memory_space<vmem>>, vector<8x16xf32>
    %cst = arith.constant dense<0.000000e+00> : vector<64x8xf32>
    %2 = tpu.matmul %0, %1, %cst {dimension_numbers = #tpu.dot_dimension_numbers<[1], [1], [0], [0], [0, 0, 1, 0], [], []>} : vector<64x16xf32>, vector<8x16xf32>, vector<64x8xf32> -> vector<64x8xf32>
    %c0_3 = arith.constant 0 : index
    %c0_4 = arith.constant 0 : index
    %3 = vector.load %arg3[%c0_3, %c0_4] : memref<64x1xf32, #tpu.memory_space<vmem>>, vector<64x1xf32>
    %4 = vector.broadcast %3 : vector<64x1xf32> to vector<64x8xf32>
    %5 = arith.addf %2, %4 : vector<64x8xf32>
    %cst_5 = arith.constant 0.000000e+00 : f32
    %6 = vector.broadcast %cst_5 : f32 to vector<64x8xf32>
    %7 = arith.maximumf %5, %6 : vector<64x8xf32>
    %c0_6 = arith.constant 0 : index
    %c0_7 = arith.constant 0 : index
    %8 = vector.load %arg4[%c0_6, %c0_7] : memref<32x64xf32, #tpu.memory_space<vmem>>, vector<32x64xf32>
    %cst_8 = arith.constant dense<0.000000e+00> : vector<32x8xf32>
    %9 = tpu.matmul %8, %7, %cst_8 {dimension_numbers = #tpu.dot_dimension_numbers<[1], [0], [0], [1], [0, 0, 1, 1], [], []>} : vector<32x64xf32>, vector<64x8xf32>, vector<32x8xf32> -> vector<32x8xf32>
    %c0_9 = arith.constant 0 : index
    %c0_10 = arith.constant 0 : index
    %10 = vector.load %arg5[%c0_9, %c0_10] : memref<32x1xf32, #tpu.memory_space<vmem>>, vector<32x1xf32>
    %11 = vector.broadcast %10 : vector<32x1xf32> to vector<32x8xf32>
    %12 = arith.addf %9, %11 : vector<32x8xf32>
    %cst_11 = arith.constant 0.000000e+00 : f32
    %13 = vector.broadcast %cst_11 : f32 to vector<32x8xf32>
    %14 = arith.maximumf %12, %13 : vector<32x8xf32>
    %c0_12 = arith.constant 0 : index
    %c0_13 = arith.constant 0 : index
    %15 = vector.load %arg6[%c0_12, %c0_13] : memref<32x1xf32, #tpu.memory_space<vmem>>, vector<32x1xf32>
    %16 = vector.broadcast %15 : vector<32x1xf32> to vector<32x8xf32>
    %17 = arith.mulf %14, %16 : vector<32x8xf32>
    %cst_14 = arith.constant dense<0.000000e+00> : vector<8xf32>
    %18 = vector.multi_reduction <add>, %17, %cst_14 [0] : vector<32x8xf32> to vector<8xf32>
    %19 = vector.shape_cast %18 : vector<8xf32> to vector<1x8xf32>
    %c0_15 = arith.constant 0 : index
    %c0_16 = arith.constant 0 : index
    %20 = vector.load %arg7[%c0_15, %c0_16] : memref<1x1xf32, #tpu.memory_space<vmem>>, vector<1x1xf32>
    %21 = vector.broadcast %20 : vector<1x1xf32> to vector<1x8xf32>
    %22 = arith.addf %19, %21 : vector<1x8xf32>
    %c0_17 = arith.constant 0 : index
    %c0_18 = arith.constant 0 : index
    %23 = vector.load %arg8[%c0_17, %c0_18] : memref<1x8xf32, #tpu.memory_space<vmem>>, vector<1x8xf32>
    tpu.vector_store %arg8[%c0_17, %c0_18], %22 {strides = array<i32>} : memref<1x8xf32, #tpu.memory_space<vmem>>, vector<1x8xf32>,
    return
  }
  func.func @transform_0(%arg0: i32) -> (i32, i32) {
    %c0_i32 = arith.constant 0 : i32
    %c0_i32_0 = arith.constant 0 : i32
    return %arg0, %c0_i32 : i32, i32
  }
  func.func @transform_1(%arg0: i32) -> (i32, i32) {
    %c0_i32 = arith.constant 0 : i32
    %c0_i32_0 = arith.constant 0 : i32
    %c0_i32_1 = arith.constant 0 : i32
    return %c0_i32, %c0_i32_0 : i32, i32
  }
  func.func @transform_2(%arg0: i32) -> (i32, i32) {
    %c0_i32 = arith.constant 0 : i32
    %c0_i32_0 = arith.constant 0 : i32
    %c0_i32_1 = arith.constant 0 : i32
    return %c0_i32, %c0_i32_0 : i32, i32
  }
  func.func @transform_3(%arg0: i32) -> (i32, i32) {
    %c0_i32 = arith.constant 0 : i32
    %c0_i32_0 = arith.constant 0 : i32
    %c0_i32_1 = arith.constant 0 : i32
    return %c0_i32, %c0_i32_0 : i32, i32
  }
  func.func @transform_4(%arg0: i32) -> (i32, i32) {
    %c0_i32 = arith.constant 0 : i32
    %c0_i32_0 = arith.constant 0 : i32
    %c0_i32_1 = arith.constant 0 : i32
    return %c0_i32, %c0_i32_0 : i32, i32
  }
  func.func @transform_5(%arg0: i32) -> (i32, i32) {
    %c0_i32 = arith.constant 0 : i32
    %c0_i32_0 = arith.constant 0 : i32
    %c0_i32_1 = arith.constant 0 : i32
    return %c0_i32, %c0_i32_0 : i32, i32
  }
  func.func @transform_6(%arg0: i32) -> (i32, i32) {
    %c0_i32 = arith.constant 0 : i32
    %c0_i32_0 = arith.constant 0 : i32
    %c0_i32_1 = arith.constant 0 : i32
    return %c0_i32, %c0_i32_0 : i32, i32
  }
  func.func @transform_7(%arg0: i32) -> (i32, i32) {
    %c0_i32 = arith.constant 0 : i32
    %c0_i32_0 = arith.constant 0 : i32
    return %c0_i32, %arg0 : i32, i32
  }
}

</mosaic_0001>

<bundles_post_ra>
// kernel: energy_dnn_apply.1
= control target key start
LH: loop header
LB: loop body
LE: loop exit
PB: predicated region body
PF: predicated region fallthrough
CT: control target
= control target key end

     0   :  { %s671_s0 = inlined_call_operand.vmem [shape: f32[8,16], index: 0, kind: input, shape index: {}]   ;;  %s672_s1 = inlined_call_operand.vmem [shape: f32[64,16], index: 1, kind: input, shape index: {}]   ;;  %s673_s2 = inlined_call_operand.vmem [shape: f32[64,1], index: 2, kind: input, shape index: {}]   ;;  %s674_s3 = inlined_call_operand.vmem [shape: f32[32,64], index: 3, kind: input, shape index: {}]   ;;  %s675_s4 = inlined_call_operand.vmem [shape: f32[32,1], index: 4, kind: input, shape index: {}]   ;;  %s676_s5 = inlined_call_operand.vmem [shape: f32[32,1], index: 5, kind: input, shape index: {}]   ;;  %s677_s6 = inlined_call_operand.<no memory space> [shape: f32[1,1], index: 6, kind: input, shape index: {}]   ;;  %s678_s7 = inlined_call_operand.hbm [shape: f32[1,8], index: 7, kind: output, shape index: {}]  }
   0x1   :  { %v12_v0 = vstv %s677_s6 }
   0x2   :  { %13 = vst [vmem:[#allocation2] sm:$0x1] %v12_v0 }
   0x3   :  { %v37_v1 = vld [vmem:[%s671_s0] sm:$0xff]  ;;  %vm86_vm0 = vcmask 130048   ;;  %v30_v3 = vld [vmem:[%s672_s1 + $0x8] sm:$0xff]  ;;  %v522_v4 = vmov 0   ;;  %v31_v5 = vld [vmem:[%s672_s1 + $0x10] sm:$0xff] }
   0x4   :  { %v29_v2 = vld [vmem:[%s672_s1] sm:$0xff]  ;;  %460 = vmatprep.subr.msk.mxu0 %vm86_vm0, %v37_v1  ;;  %498 = vset.pattern.permute.xlu0 %v522_v4  ;;  %v45_v6 = vld [vmem:[%s673_s2 + $0x38] sm:$0xff]  ;;  %v43_v7 = vld [vmem:[%s673_s2 + $0x28] sm:$0xff] }
   0x5   :  { %462 = vmatprep.mubr.msk.f32.mxu0 %vm86_vm0, %v29_v2  ;;  %461 = vmatpush3.xpose.msk.msra.mxu0 %vm86_vm0, %v37_v1  ;;  %v44_v8 = vld [vmem:[%s673_s2 + $0x30] sm:$0xff]  ;;  %v42_v9 = vld [vmem:[%s673_s2 + $0x20] sm:$0xff]  ;;  %v32_v10 = vld [vmem:[%s672_s1 + $0x18] sm:$0xff] }
   0x6   :  { %499 = vset.pattern.permute.xlu1 %v522_v4  ;;  %83 = vperm.xlu0 %498, %v45_v6   ;;  %v33_v11 = vld [vmem:[%s672_s1 + $0x20] sm:$0xff] }
   0x7   :  { %73 = vperm.xlu1 %499, %v43_v7  }
   0x8   :  { %463 = vmatmul.mubr.msk.f32.vlgmr.msra.gmra.mxu0 %vm86_vm0, %v30_v3 }
   0x9   :  { %465 = vmatprep.mubr.msk.f32.mxu0 %vm86_vm0, %v31_v5 }
   0xa   :  { %78 = vperm.xlu0 %498, %v44_v8  }
   0xb   :  { %68 = vperm.xlu1 %499, %v42_v9  }
   0xc   :  { %14 = vsyncpa [#allocation4], 0  ;;  %466 = vmatmul.mubr.msk.f32.gmra.mxu0 %vm86_vm0, %v32_v10  ;;  %v41_v12 = vld [vmem:[%s673_s2 + $0x18] sm:$0xff]  ;;  %v40_v13 = vld [vmem:[%s673_s2 + $0x10] sm:$0xff]  ;;  %vm255_vm1 = vcmask 523264   ;;  %vm385_vm2 = vcmask 64512  }
   0xd   :  { %468 = vmatprep.mubr.msk.f32.mxu0 %vm86_vm0, %v33_v11  ;;  %v34_v14 = vld [vmem:[%s672_s1 + $0x28] sm:$0xff]  ;;  %v35_v15 = vld [vmem:[%s672_s1 + $0x30] sm:$0xff]  ;;  %v38_v17 = vld [vmem:[%s673_s2] sm:$0xff]  ;;  %vm410_vm3 = vcmask 57344  }
   0xe   :  { %63 = vperm.xlu0 %498, %v41_v12   ;;  %v39_v16 = vld [vmem:[%s673_s2 + $0x8] sm:$0xff]  ;;  %v36_v18 = vld [vmem:[%s672_s1 + $0x38] sm:$0xff]  ;;  %v231_v19 = vld [vmem:[%s675_s4] sm:$0xff] }
   0xf   :  { %58 = vperm.xlu1 %499, %v40_v13   ;;  %v232_v20 = vld [vmem:[%s675_s4 + $0x8] sm:$0xff]  ;;  %v233_v21 = vld [vmem:[%s675_s4 + $0x10] sm:$0xff]  ;;  %v234_v22 = vld [vmem:[%s675_s4 + $0x18] sm:$0xff] }
  0x10   :  { %469 = vmatmul.mubr.msk.f32.gmra.mxu0 %vm86_vm0, %v34_v14  ;;  %v357_v23 = vld [vmem:[%s676_s5] sm:$0xff]  ;;  %v358_v24 = vld [vmem:[%s676_s5 + $0x8] sm:$0xff]  ;;  %v359_v25 = vld [vmem:[%s676_s5 + $0x10] sm:$0xff] }
  0x11   :  { %471 = vmatprep.mubr.msk.f32.mxu0 %vm86_vm0, %v35_v15  ;;  %v360_v26 = vld [vmem:[%s676_s5 + $0x18] sm:$0xff]  ;;  %v399_v27 = vld [vmem:[#allocation2] sm:$0x1]  ;;  %v228_v61 = vld [vmem:[%s674_s3 + $0x8] sm:$0xff] }
  0x12   :  { %53 = vperm.xlu0 %498, %v39_v16   ;;  %v227_v28 = vld [vmem:[%s674_s3] sm:$0xff]  ;;  %v229_v62 = vld [vmem:[%s674_s3 + $0x10] sm:$0xff]  ;;  %v230_v63 = vld [vmem:[%s674_s3 + $0x18] sm:$0xff]  ;;  %s523_s3 = smov [#allocation3]  }
  0x13   :  { %48 = vperm.xlu1 %499, %v38_v17   ;;  %490 = vmatprep.mubr.msk.f32.mxu1 %vm255_vm1, %v227_v28  ;;  %s418_s30 = sshll.u32 %s523_s3, 4  ;;  %s419_s30 = int_to_ptr.vmem [resolvable:$true] %s418_s30 }
  0x14   :  { %472 = vmatmul.mubr.msk.f32.gmra.mxu0 %vm86_vm0, %v36_v18  ;;  %s500_s8 = scalar_lea.vmem %s419_s30, 16  ;;  %s504_s6 = scalar_lea.vmem %s419_s30, 32 }
  0x15   :  { %p501_p0 = scmp.ne.s32.totalorder %s419_s30, %s500_s8  ;;  %p505_p1 = scmp.lt.s32.totalorder %s419_s30, %s419_s30 }
  0x16   :  { %237 = vperm.xlu0 %498, %v231_v19   ;;  %p506_p2 = scmp.lt.s32.totalorder %s504_s6, %s500_s8 }
  0x17   :  { %242 = vperm.xlu1 %499, %v232_v20  }
  0x18   :  { %p507_p3 = por %p506_p2, %p505_p1 }
  0x1a   :  { %247 = vperm.xlu0 %498, %v233_v21   ;;  %p508_p4 = pnand %p507_p3, %p501_p0 }
  0x1b   :  { %252 = vperm.xlu1 %499, %v234_v22  }
  0x1e   :  { %363 = vperm.xlu0 %498, %v357_v23  }
  0x1f   :  { %368 = vperm.xlu1 %499, %v358_v24  }
  0x22   :  { %373 = vperm.xlu0 %498, %v359_v25  }
  0x23   :  { %378 = vperm.xlu1 %499, %v360_v26  }
  0x26   :  { %402 = vperm.xlu0 %498, %v399_v27  }
  0x81   :  { %v84_v31 = vpop.permute.xlu0 %83 }
  0x82   :  { %v74_v33 = vpop.permute.xlu1 %73 }
  0x85   :  { %v79_v36 = vpop.permute.xlu0 %78 }
  0x86   :  { %v69_v38 = vpop.permute.xlu1 %68 }
  0x89   :  { %v64_v45 = vpop.permute.xlu0 %63 }
  0x8a   :  { %v59_v48 = vpop.permute.xlu1 %58 }
  0x8d   :  { %v54_v53 = vpop.permute.xlu0 %53 }
  0x8e   :  { %v49_v56 = vpop.permute.xlu1 %48 }
  0x91   :  { %v238_v0 = vpop.permute.xlu0 %237 }
  0x92   :  { %v243_v1 = vpop.permute.xlu1 %242 }
  0x95   :  { %v248_v2 = vpop.permute.xlu0 %247 }
  0x96   :  { %v253_v3 = vpop.permute.xlu1 %252 }
  0x99   :  { %v364_v7 = vpop.permute.xlu0 %363 }
  0x9a   :  { %v369_v10 = vpop.permute.xlu1 %368 }
  0x9d   :  { %v374_v21 = vpop.permute.xlu0 %373 }
  0x9e   :  { %v379_v22 = vpop.permute.xlu1 %378 }
  0xc8   :  { %v464_v29 = vpop.f32.mrf.mxu0 }
  0xc9   :  { %v186_v54 = vadd.f32 %v464_v29, %v54_v53 }
  0xca   :  { %v180_v30 = vpop.f32.mrf.mxu0 }
  0xcb   :  { %v181_v57 = vadd.f32 %v180_v30, %v49_v56  ;;  %v220_v59 = vmax.f32 %v186_v54, 0.0  ;;  %v405_v30 = vlaneseq }
  0xcc   :  { %v467_v32 = vpop.f32.mrf.mxu0 }
  0xcd   :  { %v196_v49 = vadd.f32 %v467_v32, %v64_v45  ;;  %v219_v60 = vmax.f32 %v181_v57, 0.0 }
  0xce   :  { %v190_v34 = vpop.f32.mrf.mxu0 }
  0xcf   :  { %v191_v51 = vadd.f32 %v190_v34, %v59_v48  ;;  %v222_v55 = vmax.f32 %v196_v49, 0.0 }
  0xd0   :  { %v470_v35 = vpop.f32.mrf.mxu0 }
  0xd1   :  { %v206_v42 = vadd.f32 %v470_v35, %v74_v33  ;;  %v221_v58 = vmax.f32 %v191_v51, 0.0  ;;  %v406_v33 = vshrl.u32 %v405_v30, 7 }
  0xd2   :  { %v200_v37 = vpop.f32.mrf.mxu0 }
  0xd3   :  { %v201_v46 = vadd.f32 %v200_v37, %v69_v38  ;;  %v224_v50 = vmax.f32 %v206_v42, 0.0  ;;  %v403_v38 = vpop.permute.xlu0 %402 }
  0xd4   :  { %v473_v39 = vpop.f32.mrf.mxu0 }
  0xd5   :  { %v216_v40 = vadd.f32 %v473_v39, %v84_v31  ;;  %v223_v52 = vmax.f32 %v201_v46, 0.0 }
  0xd6   :  { %v210_v41 = vpop.f32.mrf.mxu0 }
  0xd7   :  { %v226_v43 = vmax.f32 %v216_v40, 0.0  ;;  %v211_v44 = vadd.f32 %v210_v41, %v79_v36  ;;  %v407_v36 = vsub.s32 0, %v406_v33 }
  0xd9   :  { %v225_v47 = vmax.f32 %v211_v44, 0.0  ;;  %474 = vmatprep.subr.mxu1 %v226_v43  ;;  %v408_v40 = vrot.slane %v403_v38, %v407_v36 }
  0xda   :  { %475 = vmatpush3.msra.mxu1 %v226_v43 }
  0xdb   :  { %476 = vmatprep.subr.mxu1 %v225_v47 }
  0xdc   :  { %477 = vmatpush3.msra.mxu1 %v225_v47 }
  0xdd   :  { %478 = vmatprep.subr.mxu1 %v224_v50 }
  0xde   :  { %479 = vmatpush3.msra.mxu1 %v224_v50 }
  0xdf   :  { %480 = vmatprep.subr.mxu1 %v223_v52 }
  0xe0   :  { %481 = vmatpush3.msra.mxu1 %v223_v52 }
  0xe1   :  { %482 = vmatprep.subr.mxu1 %v222_v55 }
  0xe2   :  { %483 = vmatpush3.msra.mxu1 %v222_v55 }
  0xe3   :  { %484 = vmatprep.subr.mxu1 %v221_v58 }
  0xe4   :  { %485 = vmatpush3.msra.mxu1 %v221_v58 }
  0xe5   :  { %486 = vmatprep.subr.mxu1 %v220_v59 }
  0xe6   :  { %487 = vmatpush3.msra.mxu1 %v220_v59 }
  0xe7   :  { %488 = vmatprep.subr.mxu1 %v219_v60 }
  0xe8   :  { %489 = vmatpush3.msra.mxu1 %v219_v60 }
  0xe9   :  { %491 = vmatmul.mubr.msk.f32.vlgmr.msra.gmra.mxu1 %vm255_vm1, %v228_v61 }
  0xea   :  { %493 = vmatprep.mubr.msk.f32.mxu1 %vm255_vm1, %v229_v62 }
  0xed   :  { %494 = vmatmul.mubr.msk.f32.gmra.mxu1 %vm255_vm1, %v230_v63 }
 0x1a9   :  { %v492_v4 = vpop.f32.mrf.mxu1 }
 0x1aa   :  { %v340_v5 = vadd.f32 %v492_v4, %v243_v1 }
 0x1ab   :  { %v334_v6 = vpop.f32.mrf.mxu1 }
 0x1ac   :  { %v354_v8 = vmax.f32 %v340_v5, 0.0  ;;  %v335_v9 = vadd.f32 %v334_v6, %v238_v0 }
 0x1ad   :  { %v495_v11 = vpop.f32.mrf.mxu1 }
 0x1ae   :  { %v353_v12 = vmax.f32 %v335_v9, 0.0  ;;  %v350_v13 = vadd.f32 %v495_v11, %v253_v3  ;;  %v382_v15 = vmul.f32 %v369_v10, %v354_v8 }
 0x1af   :  { %v344_v14 = vpop.f32.mrf.mxu1 }
 0x1b0   :  { %v381_v16 = vmul.f32 %v364_v7, %v353_v12  ;;  %v356_v17 = vmax.f32 %v350_v13, 0.0  ;;  %v345_v18 = vadd.f32 %v344_v14, %v248_v2  ;;  %v387_v23 = vsel %vm385_vm2, %v382_v15, 0.0 }
 0x1b2   :  { %v386_v19 = vsel %vm385_vm2, %v381_v16, 0.0  ;;  %v355_v20 = vmax.f32 %v345_v18, 0.0  ;;  %v384_v24 = vmul.f32 %v379_v22, %v356_v17 }
 0x1b3   :  { %v388_v26 = vadd.f32 %v387_v23, %v386_v19 }
 0x1b4   :  { %v383_v25 = vmul.f32 %v374_v21, %v355_v20  ;;  %v391_v29 = vsel %vm385_vm2, %v384_v24, 0.0 }
 0x1b6   :  { %v389_v27 = vsel %vm385_vm2, %v383_v25, 0.0 }
 0x1b7   :  { %v390_v28 = vadd.f32 %v389_v27, %v388_v26 }
 0x1b9   :  { %v392_v31 = vadd.f32 %v391_v29, %v390_v28 }
 0x1bb   :  { %v393_v32 = vrot.slane %v392_v31, 4 }
 0x1bd   :  { %v394_v34 = vadd.f32 %v393_v32, %v392_v31 }
 0x1bf   :  { %v395_v35 = vrot.slane %v394_v34, 2 }
 0x1c1   :  { %v396_v37 = vadd.f32 %v395_v35, %v394_v34 }
 0x1c3   :  { %v397_v39 = vrot.slane %v396_v37, 1 }
 0x1c5   :  { %v398_v41 = vadd.f32 %v397_v39, %v396_v37 }
 0x1c7   :  { %v409_v42 = vadd.f32 %v408_v40, %v398_v41 }
 0x1c9   :  { %411 = vst.msk [vmem:[#allocation3] sm:$0x1] %vm410_vm3, %v409_v42 }
 0x1ca   :  { %511 = shalt.err (!%p508_p4)
}
 0x1cb   :  { %421 = dma.vmem_to_hbm [thread:$0]  %s419_s30, 16, %s678_s7, [#allocation4]  }
 0x1cc   :  { %520 = dma.done.wait [#allocation4], 16  }
 0x1cd   :  { %521 = vsyncadd [#allocation4], 4294967280 }
 0x1ce   :  { %425 = vsyncpa [#allocation4], 1 }

</bundles_post_ra>
